<compile_context>
chip_gen: v7x
topology: tpu7x:2x2x1
jax: 0.10.0
libtpu: 0.0.40
codegen_flags: <defaults>
</compile_context>

<pallas_src>
import jax
import jax.numpy as jnp
from jax.experimental import pallas as pl
from jax.experimental.pallas import tpu as pltpu


def cross_attn_kernel(cat_ref, mask_ref, w1_ref, b1_ref, w2_ref, out_ref, wts_ref):
    tr, S, two_e = cat_ref.shape
    E = two_e // 2
    D = w1_ref.shape[1]

    cat = cat_ref[...]                                    # (tr, S, 2E) bf16
    mask = mask_ref[...]                                  # (tr, S)     f32

    # attn_1: single fused K=2E MXU matmul with f32 accumulation, then tanh (EUP).
    h = jnp.tanh(
        jnp.dot(cat.reshape(tr * S, two_e), w1_ref[...],
                preferred_element_type=jnp.float32)
        + b1_ref[...]
    )                                                     # (tr*S, D) f32
    # TODO(synk): on v6e/v7x the tanh could run in bf16 (2x EUP throughput); kept f32
    # so the same kernel is accurate on v5e (no bf16 EUP) without a chip switch.

    # attn_2 (Linear D->1, no bias): VPU multiply + lane reduce, not an N=1 MXU matmul.
    scores = jnp.sum(h.reshape(tr, S, D) * w2_ref[...], axis=-1)   # (tr, S)
    scores = mask * scores        # multiplicative mask, exactly as in the PyTorch module

    # softmax over S (lane axis) per row
    m = jnp.max(scores, axis=-1, keepdims=True)           # (tr, 1)
    e = jnp.exp(scores - m)                               # (tr, S)
    denom = jnp.sum(e, axis=-1, keepdims=True)            # (tr, 1)
    w = e * pl.reciprocal(denom, approx=True)             # EUP recip, ~free

    wts_ref[...] = w                                      # (tr, S)

    # weighted sum over S of the src half of cat (static lane slice, no extra HBM read)
    src = cat[:, :, :E].astype(jnp.float32)               # (tr, S, E)
    out_ref[...] = jnp.sum(w[:, :, None] * src, axis=1)   # (tr, E)


def _divisors(n):
    out = set()
    i = 1
    while i * i <= n:
        if n % i == 0:
            out.add(i)
            out.add(n // i)
        i += 1
    return sorted(out)


def _vmem_capacity_bytes():
    try:
        return int(pltpu.get_tpu_info().vmem_capacity_bytes)
    except Exception:
        return 64 * 1024 * 1024        # conservative fallback (v7x per-core VMEM)


def _choose_tile_r(r_pad8, S, E, D, max_tile_r=None):
    """Largest row tile that (a) divides r_pad8, (b) fits ~50% of VMEM, and
    (c) leaves >=4 grid steps when the problem is big enough (megacore / overlap)."""
    vmem_cap = _vmem_capacity_bytes()
    budget = int(0.5 * vmem_cap)
    # per-row VMEM bytes: double-buffered in/out tiles + in-kernel temporaries
    per_row = (
        2 * (S * 2 * E * 2)          # cat tile (bf16), 2 pipeline buffers
        + 2 * (S * 4)                # mask tile
        + 2 * (E * 4 + S * 4)        # out + weights tiles
        + S * 2 * E * 2              # loaded cat value
        + S * D * 4                  # h
        + 2 * S * E * 4              # src f32 + weighted product
        + 16 * S                     # scores / exp / misc
    )
    fixed = 2 * (2 * E * D * 2 + 2 * D * 4) + (1 << 20)   # resident weights + slack
    cap_rows = max(8, ((budget - fixed) // max(per_row, 1)) // 8 * 8)
    if max_tile_r is not None:
        cap_rows = min(cap_rows, max(8, (max_tile_r // 8) * 8))

    cands = [8 * d for d in _divisors(r_pad8 // 8)]
    feasible = [c for c in cands if c <= cap_rows] or [8]
    preferred = [c for c in feasible if r_pad8 // c >= 4 and c >= 64]
    tile_r = max(preferred) if preferred else max(feasible)
    vmem_limit = max(32 * 1024 * 1024, min(int(0.75 * vmem_cap), vmem_cap))
    return tile_r, vmem_limit


def cross_attention(src_reps, tgt_reps, mask, w1, b1, w2, max_tile_r=None):
    """src_reps/tgt_reps: (B, T, S, E) f32, mask: (B, T, S).
       w1: (D, 2E) torch-style Linear weight; b1: (D,); w2: (1, D)."""
    B, T, S, E = src_reps.shape
    D = w1.shape[0]
    R = B * T
    r_pad8 = ((R + 7) // 8) * 8
    pad = r_pad8 - R
    # NOTE: S % 8 == 0 keeps the in-kernel (tile_r, S, 2E)->(tile_r*S, 2E) reshape a
    # free relayout; other S still give correct results, just with extra VMEM copies.

    # Fold concat + bf16 cast + (tiny) 8-row pad into one wrapper-side copy.
    cat = jnp.concatenate(
        [src_reps.reshape(R, S, E), tgt_reps.reshape(R, S, E)], axis=-1)   # (R, S, 2E)
    mask_f = mask.reshape(R, S).astype(jnp.float32)
    if pad:
        cat = jnp.pad(cat, ((0, pad), (0, 0), (0, 0)))
        mask_f = jnp.pad(mask_f, ((0, pad), (0, 0)))
    cat = cat.astype(jnp.bfloat16)

    # torch Linear: x @ W^T, W1 is (D, 2E)  ->  cat @ w1.T
    w1_k = w1.T.astype(jnp.bfloat16)                 # (2E, D), resident in VMEM
    b1_2d = b1.reshape(1, D).astype(jnp.float32)
    w2_row = w2.reshape(1, D).astype(jnp.float32)

    tile_r, vmem_limit = _choose_tile_r(r_pad8, S, E, D, max_tile_r)
    grid = (r_pad8 // tile_r,)

    cost = pl.CostEstimate(
        flops=int(2 * r_pad8 * S * 2 * E * D       # attn_1 matmul
                  + 2 * r_pad8 * S * D             # attn_2 reduce
                  + 2 * r_pad8 * S * E             # weighted sum
                  + 6 * r_pad8 * S),               # softmax misc
        transcendentals=int(r_pad8 * S * D + r_pad8 * S + r_pad8),
        bytes_accessed=int(r_pad8 * S * 2 * E * 2 + r_pad8 * S * 4
                           + r_pad8 * E * 4 + r_pad8 * S * 4
                           + 2 * E * D * 2 + 2 * D * 4),
    )

    out_flat, wts_flat = pl.pallas_call(
        cross_attn_kernel,
        out_shape=(
            jax.ShapeDtypeStruct((r_pad8, E), jnp.float32),
            jax.ShapeDtypeStruct((r_pad8, S), jnp.float32),
        ),
        grid_spec=pltpu.PrefetchScalarGridSpec(
            num_scalar_prefetch=0,
            grid=grid,
            in_specs=[
                pl.BlockSpec((tile_r, S, 2 * E), lambda i: (i, 0, 0)),   # cat rows (bf16)
                pl.BlockSpec((tile_r, S), lambda i: (i, 0)),             # mask rows
                pl.BlockSpec((2 * E, D), lambda i: (0, 0)),              # W1 (resident)
                pl.BlockSpec((1, D), lambda i: (0, 0)),                  # b1
                pl.BlockSpec((1, D), lambda i: (0, 0)),                  # w2
            ],
            out_specs=[
                pl.BlockSpec((tile_r, E), lambda i: (i, 0)),             # attn_out
                pl.BlockSpec((tile_r, S), lambda i: (i, 0)),             # attn_weights
            ],
        ),
        compiler_params=pltpu.CompilerParams(
            dimension_semantics=("parallel",),       # rows independent -> megacore
            vmem_limit_bytes=vmem_limit),
        cost_estimate=cost,
    )(cat, mask_f, w1_k, b1_2d, w2_row)

    attn_out = out_flat[:R].reshape(B, T, E)
    attn_weights = wts_flat[:R].reshape(B, T, S)
    return attn_out, attn_weights


def cross_attention_ref(src_reps, tgt_reps, mask, w1, b1, w2):
    """Pure-JAX f32 reference mirroring the PyTorch forward exactly."""
    cat = jnp.concatenate([src_reps, tgt_reps], axis=-1)             # (B,T,S,2E)
    h = jnp.tanh(jnp.einsum('btse,de->btsd', cat, w1) + b1)          # (B,T,S,D)
    scores = jnp.einsum('btsd,od->btso', h, w2)[..., 0]              # (B,T,S)
    scores = mask * scores
    weights = jax.nn.softmax(scores, axis=2)                         # (B,T,S)
    out = jnp.sum(weights[..., None] * src_reps, axis=2)             # (B,T,E)
    return out, weights


if __name__ == "__main__":
    def run_case(B, T, S, E, D, seed, max_tile_r=None):
        key = jax.random.PRNGKey(seed)
        k1, k2, k3, k4, k5, k6 = jax.random.split(key, 6)
        src_reps = jax.random.normal(k1, (B, T, S, E), dtype=jnp.float32)
        tgt_reps = jax.random.normal(k2, (B, T, S, E), dtype=jnp.float32)
        mask = (jax.random.uniform(k3, (B, T, S)) > 0.3).astype(jnp.float32)
        # torch Linear shapes: weight (out, in)
        w1 = 0.1 * jax.random.normal(k4, (D, 2 * E), dtype=jnp.float32)   # attn_1.weight
        b1 = 0.1 * jax.random.normal(k5, (D,), dtype=jnp.float32)         # attn_1.bias
        w2 = 0.1 * jax.random.normal(k6, (1, D), dtype=jnp.float32)       # attn_2.weight

        attn_out, attn_weights = cross_attention(src_reps, tgt_reps, mask,
                                                 w1, b1, w2, max_tile_r=max_tile_r)
        jax.block_until_ready((attn_out, attn_weights))

        ref_out, ref_weights = cross_attention_ref(src_reps, tgt_reps, mask, w1, b1, w2)
        # bf16 matmul inputs + approx reciprocal -> relaxed tolerance vs f32 reference.
        assert jnp.allclose(attn_out, ref_out, atol=2e-2, rtol=2e-2), \
            float(jnp.max(jnp.abs(attn_out - ref_out)))
        assert jnp.allclose(attn_weights, ref_weights, atol=2e-2, rtol=2e-2), \
            float(jnp.max(jnp.abs(attn_weights - ref_weights)))

    # Single-tile case (R = 8 -> one grid step).
    run_case(B=2, T=4, S=8, E=16, D=32, seed=0)
    # Multi-step grid + row padding (R = 15 -> 16 padded rows, two 8-row tiles).
    run_case(B=3, T=5, S=8, E=16, D=32, seed=1, max_tile_r=8)
    # Larger feature sizes (2E = 128 fills one MXU K pass).
    run_case(B=2, T=16, S=16, E=64, D=64, seed=2)

    print("KERNEL_OK")
</pallas_src>

<mosaic_0001>
module attributes {stable_mosaic.version = 11 : i64} {
  func.func @cross_attn_kernel(%arg0: i32, %arg1: memref<8x8x32xbf16, #tpu.memory_space<vmem>>, %arg2: memref<8x8xf32, #tpu.memory_space<vmem>>, %arg3: memref<32x32xbf16, #tpu.memory_space<vmem>>, %arg4: memref<1x32xf32, #tpu.memory_space<vmem>>, %arg5: memref<1x32xf32, #tpu.memory_space<vmem>>, %arg6: memref<8x16xf32, #tpu.memory_space<vmem>>, %arg7: memref<8x8xf32, #tpu.memory_space<vmem>>) attributes {dimension_semantics = [#tpu.dimension_semantics<parallel>], iteration_bounds = array<i64: 1>, scalar_prefetch = 0 : i64, scratch_operands = 0 : i64, tpu.core_type = #tpu.core_type<tc>, window_params = [{transform_indices = @transform_0, window_bounds = array<i64: 8, 8, 32>}, {transform_indices = @transform_1, window_bounds = array<i64: 8, 8>}, {pipeline_mode = #tpu.pipeline_mode<synchronous>, transform_indices = @transform_2, window_bounds = array<i64: 32, 32>}, {pipeline_mode = #tpu.pipeline_mode<synchronous>, transform_indices = @transform_3, window_bounds = array<i64: 1, 32>}, {pipeline_mode = #tpu.pipeline_mode<synchronous>, transform_indices = @transform_4, window_bounds = array<i64: 1, 32>}, {transform_indices = @transform_5, window_bounds = array<i64: 8, 16>}, {transform_indices = @transform_6, window_bounds = array<i64: 8, 8>}]} {
    %c0 = arith.constant 0 : index
    %c0_0 = arith.constant 0 : index
    %c0_1 = arith.constant 0 : index
    %0 = vector.load %arg1[%c0, %c0_0, %c0_1] : memref<8x8x32xbf16, #tpu.memory_space<vmem>>, vector<8x8x32xbf16>
    %c0_2 = arith.constant 0 : index
    %c0_3 = arith.constant 0 : index
    %1 = vector.load %arg2[%c0_2, %c0_3] : memref<8x8xf32, #tpu.memory_space<vmem>>, vector<8x8xf32>
    %2 = vector.shape_cast %0 : vector<8x8x32xbf16> to vector<64x32xbf16>
    %c0_4 = arith.constant 0 : index
    %c0_5 = arith.constant 0 : index
    %3 = vector.load %arg3[%c0_4, %c0_5] : memref<32x32xbf16, #tpu.memory_space<vmem>>, vector<32x32xbf16>
    %cst = arith.constant dense<0.000000e+00> : vector<64x32xf32>
    %4 = tpu.matmul %2, %3, %cst {dimension_numbers = #tpu.dot_dimension_numbers<[1], [0], [0], [1], [0, 0, 1, 1], [], []>} : vector<64x32xbf16>, vector<32x32xbf16>, vector<64x32xf32> -> vector<64x32xf32>
    %c0_6 = arith.constant 0 : index
    %c0_7 = arith.constant 0 : index
    %5 = vector.load %arg4[%c0_6, %c0_7] : memref<1x32xf32, #tpu.memory_space<vmem>>, vector<1x32xf32>
    %6 = vector.broadcast %5 : vector<1x32xf32> to vector<64x32xf32>
    %7 = arith.addf %4, %6 : vector<64x32xf32>
    %8 = math.tanh %7 : vector<64x32xf32>
    %9 = vector.shape_cast %8 : vector<64x32xf32> to vector<8x8x32xf32>
    %c0_8 = arith.constant 0 : index
    %c0_9 = arith.constant 0 : index
    %10 = vector.load %arg5[%c0_8, %c0_9] : memref<1x32xf32, #tpu.memory_space<vmem>>, vector<1x32xf32>
    %11 = vector.shape_cast %10 : vector<1x32xf32> to vector<1x1x32xf32>
    %12 = vector.broadcast %11 : vector<1x1x32xf32> to vector<8x8x32xf32>
    %13 = arith.mulf %9, %12 : vector<8x8x32xf32>
    %cst_10 = arith.constant dense<0.000000e+00> : vector<8x8xf32>
    %14 = vector.multi_reduction <add>, %13, %cst_10 [2] : vector<8x8x32xf32> to vector<8x8xf32>
    %15 = arith.mulf %1, %14 : vector<8x8xf32>
    %cst_11 = arith.constant dense<0xFF800000> : vector<8xf32>
    %16 = vector.multi_reduction <maximumf>, %15, %cst_11 [1] : vector<8x8xf32> to vector<8xf32>
    %17 = vector.shape_cast %16 : vector<8xf32> to vector<8x1xf32>
    %18 = vector.broadcast %17 : vector<8x1xf32> to vector<8x8xf32>
    %19 = arith.subf %15, %18 : vector<8x8xf32>
    %20 = math.exp %19 : vector<8x8xf32>
    %cst_12 = arith.constant dense<0.000000e+00> : vector<8xf32>
    %21 = vector.multi_reduction <add>, %20, %cst_12 [1] : vector<8x8xf32> to vector<8xf32>
    %22 = vector.shape_cast %21 : vector<8xf32> to vector<8x1xf32>
    %23 = tpu.reciprocal %22 {approx = true} : vector<8x1xf32> -> vector<8x1xf32>
    %24 = vector.broadcast %23 : vector<8x1xf32> to vector<8x8xf32>
    %25 = arith.mulf %20, %24 : vector<8x8xf32>
    %c0_13 = arith.constant 0 : index
    %c0_14 = arith.constant 0 : index
    %26 = vector.load %arg7[%c0_13, %c0_14] : memref<8x8xf32, #tpu.memory_space<vmem>>, vector<8x8xf32>
    tpu.vector_store %arg7[%c0_13, %c0_14], %25 {strides = array<i32>} : memref<8x8xf32, #tpu.memory_space<vmem>>, vector<8x8xf32>,
    %27 = vector.extract_strided_slice %0 {offsets = [0, 0, 0], sizes = [8, 8, 16], strides = [1, 1, 1]} : vector<8x8x32xbf16> to vector<8x8x16xbf16>
    %28 = arith.extf %27 : vector<8x8x16xbf16> to vector<8x8x16xf32>
    %29 = vector.shape_cast %25 : vector<8x8xf32> to vector<8x8x1xf32>
    %30 = vector.broadcast %29 : vector<8x8x1xf32> to vector<8x8x16xf32>
    %31 = arith.mulf %30, %28 : vector<8x8x16xf32>
    %cst_15 = arith.constant dense<0.000000e+00> : vector<8x16xf32>
    %32 = vector.multi_reduction <add>, %31, %cst_15 [1] : vector<8x8x16xf32> to vector<8x16xf32>
    %c0_16 = arith.constant 0 : index
    %c0_17 = arith.constant 0 : index
    %33 = vector.load %arg6[%c0_16, %c0_17] : memref<8x16xf32, #tpu.memory_space<vmem>>, vector<8x16xf32>
    tpu.vector_store %arg6[%c0_16, %c0_17], %32 {strides = array<i32>} : memref<8x16xf32, #tpu.memory_space<vmem>>, vector<8x16xf32>,
    return
  }
  func.func @transform_0(%arg0: i32) -> (i32, i32, i32) {
    %c0_i32 = arith.constant 0 : i32
    %c0_i32_0 = arith.constant 0 : i32
    %c0_i32_1 = arith.constant 0 : i32
    return %arg0, %c0_i32, %c0_i32_0 : i32, i32, i32
  }
  func.func @transform_1(%arg0: i32) -> (i32, i32) {
    %c0_i32 = arith.constant 0 : i32
    %c0_i32_0 = arith.constant 0 : i32
    return %arg0, %c0_i32 : i32, i32
  }
  func.func @transform_2(%arg0: i32) -> (i32, i32) {
    %c0_i32 = arith.constant 0 : i32
    %c0_i32_0 = arith.constant 0 : i32
    %c0_i32_1 = arith.constant 0 : i32
    return %c0_i32, %c0_i32_0 : i32, i32
  }
  func.func @transform_3(%arg0: i32) -> (i32, i32) {
    %c0_i32 = arith.constant 0 : i32
    %c0_i32_0 = arith.constant 0 : i32
    %c0_i32_1 = arith.constant 0 : i32
    return %c0_i32, %c0_i32_0 : i32, i32
  }
  func.func @transform_4(%arg0: i32) -> (i32, i32) {
    %c0_i32 = arith.constant 0 : i32
    %c0_i32_0 = arith.constant 0 : i32
    %c0_i32_1 = arith.constant 0 : i32
    return %c0_i32, %c0_i32_0 : i32, i32
  }
  func.func @transform_5(%arg0: i32) -> (i32, i32) {
    %c0_i32 = arith.constant 0 : i32
    %c0_i32_0 = arith.constant 0 : i32
    return %arg0, %c0_i32 : i32, i32
  }
  func.func @transform_6(%arg0: i32) -> (i32, i32) {
    %c0_i32 = arith.constant 0 : i32
    %c0_i32_0 = arith.constant 0 : i32
    return %arg0, %c0_i32 : i32, i32
  }
}

</mosaic_0001>

<bundles_post_ra>
// kernel: tpu_custom_call.1
= control target key start
LH: loop header
LB: loop body
LE: loop exit
PB: predicated region body
PF: predicated region fallthrough
CT: control target
= control target key end

     0   :  { %12 = vsyncpa [#allocation3], 0  ;;  %s861_s0 = inlined_call_operand.hbm [shape: bf16[8,8,32], index: 0, kind: input, shape index: {}]   ;;  %s862_s1 = inlined_call_operand.hbm [shape: f32[8,8], index: 1, kind: input, shape index: {}]   ;;  %s863_s2 = inlined_call_operand.hbm [shape: bf16[32,32], index: 2, kind: input, shape index: {}]   ;;  %s864_s3 = inlined_call_operand.vmem [shape: f32[1,32], index: 3, kind: input, shape index: {}]   ;;  %s865_s4 = inlined_call_operand.vmem [shape: f32[1,32], index: 4, kind: input, shape index: {}]   ;;  %s866_s5 = inlined_call_operand.hbm [shape: f32[8,16], index: 5, kind: output, shape index: {0}]   ;;  %s867_s6 = inlined_call_operand.hbm [shape: f32[8,8], index: 6, kind: output, shape index: {1}]  }
   0x1   :  { %13 = vsyncpa [#allocation6], 0 }
   0x2   :  { %14 = vsyncpa [#allocation4], 0 }
   0x3   :  { %15 = vsyncpa [#allocation10], 0  ;;  %s677_s21 = smov [#allocation5]   ;;  %s678_s23 = smov [#allocation2]  }
   0x4   :  { %s34_s22 = sshll.u32 %s677_s21, 4  ;;  %s21_s24 = sshll.u32 %s678_s23, 4  ;;  %s35_s22 = int_to_ptr.vmem [resolvable:$true] %s34_s22  ;;  %s719_s24 = int_to_ptr.vmem [resolvable:$true] %s21_s24 }
   0x5   :  { %s559_s27 = scalar_lea.hbm %s862_s1, 128 }
   0x6   :  { %p560_p0 = scmp.ne.s32.totalorder %s862_s1, %s559_s27  ;;  %p563_p1 = scmp.lt.u32.totalorder %s559_s27, %s862_s1 }
   0x8   :  { %p565_p2 = pnand %p563_p1, %p560_p0 }
   0xa   :  { %568 = shalt.err (!%p565_p2)
}
   0xb   :  { %s569_s8 = scalar_lea.vmem %s35_s22, 128  ;;  %p574_p4 = scmp.lt.s32.totalorder %s35_s22, %s35_s22 }
   0xc   :  { %p570_p3 = scmp.ne.s32.totalorder %s35_s22, %s569_s8  ;;  %p575_p5 = scmp.lt.s32.totalorder %s569_s8, %s569_s8 }
   0xe   :  { %p576_p6 = por %p575_p5, %p574_p4 }
  0x10   :  { %p577_p7 = pnand %p576_p6, %p570_p3 }
  0x12   :  { %580 = shalt.err (!%p577_p7)
}
  0x13   :  { %37 = dma.hbm_to_vmem [thread:$0]  %s862_s1, 128, %s35_s22, [#allocation6]  }
  0x14   :  { %s581_s13 = scalar_lea.hbm %s861_s0, 512 }
  0x15   :  { %p582_p8 = scmp.ne.s32.totalorder %s861_s0, %s581_s13  ;;  %p585_p9 = scmp.lt.u32.totalorder %s581_s13, %s861_s0 }
  0x17   :  { %p587_p10 = pnand %p585_p9, %p582_p8 }
  0x19   :  { %590 = shalt.err (!%p587_p10)
}
  0x1a   :  { %s591_s18 = scalar_lea.vmem %s719_s24, 512  ;;  %p596_p12 = scmp.lt.s32.totalorder %s719_s24, %s719_s24 }
  0x1b   :  { %p592_p11 = scmp.ne.s32.totalorder %s719_s24, %s591_s18  ;;  %p597_p13 = scmp.lt.s32.totalorder %s591_s18, %s591_s18 }
  0x1d   :  { %p598_p0 = por %p597_p13, %p596_p12 }
  0x1f   :  { %p599_p1 = pnand %p598_p0, %p592_p11 }
  0x21   :  { %602 = shalt.err (!%p599_p1)
}
  0x22   :  { %s679_s1 = smov 64   ;;  %s680_s19 = smov 4  }
  0x23   :  { %27 = dma.hbm_to_vmem [thread:$0]  %s861_s0, 512, %s719_s24, [#allocation3], %s679_s1, %s679_s1, %s680_s19  }
  0x24   :  { %s681_s22 = smov [#allocation7]   ;;  %s603_s27 = scalar_lea.hbm %s863_s2, 256 }
  0x25   :  { %s43_s23 = sshll.u32 %s681_s22, 4  ;;  %p604_p2 = scmp.ne.s32.totalorder %s863_s2, %s603_s27  ;;  %s44_s23 = int_to_ptr.vmem [resolvable:$true] %s43_s23 }
  0x26   :  { %p607_p3 = scmp.lt.u32.totalorder %s603_s27, %s863_s2 }
  0x28   :  { %p609_p4 = pnand %p607_p3, %p604_p2 }
  0x2a   :  { %612 = shalt.err (!%p609_p4)
}
  0x2b   :  { %s613_s8 = scalar_lea.vmem %s44_s23, 256  ;;  %p618_p6 = scmp.lt.s32.totalorder %s44_s23, %s44_s23 }
  0x2c   :  { %p614_p5 = scmp.ne.s32.totalorder %s44_s23, %s613_s8  ;;  %p619_p7 = scmp.lt.s32.totalorder %s613_s8, %s613_s8 }
  0x2e   :  { %p620_p8 = por %p619_p7, %p618_p6 }
  0x30   :  { %p621_p9 = pnand %p620_p8, %p614_p5 }
  0x32   :  { %624 = shalt.err (!%p621_p9)
}
  0x33   :  { %49 = dma.hbm_to_vmem [thread:$0]  %s863_s2, 256, %s44_s23, [#allocation6], %s679_s1, %s679_s1, %s680_s19  }
  0x34   :  { %669 = dma.done.wait [#allocation3], 512  }
  0x35   :  { %670 = vsyncadd [#allocation3], 4294966784 }
  0x36   :  { %671 = dma.done.wait [#allocation6], 384  }
  0x37   :  { %672 = vsyncadd [#allocation6], 4294966912  ;;  %v529_v0 = vld [vmem:[#allocation7] sm:$0xff]   ;;  %v530_v1 = vld [vmem:[#allocation7 + $0x8] sm:$0xff]   ;;  %vm116_vm0 = vcmask 261120   ;;  %v249_v48 = vlaneseq  ;;  %vm283_vm1 = vcmask 1041409  }
  0x38   :  { %506 = vmatprep.subr.bf16.mxu0 %v529_v0  ;;  %518 = vmatprep.subr.bf16.mxu1 %v529_v0  ;;  %v762_v2 = vld [vmem:[#allocation2] sm:$0xff]   ;;  %v764_v3 = vld [vmem:[#allocation2 + $0x10] sm:$0xff]   ;;  %v766_v4 = vld [vmem:[#allocation2 + $0x8] sm:$0xff]   ;;  %vm285_vm2 = vcmask 1042434   ;;  %vm287_vm3 = vcmask 1043459   ;;  %vm289_vm4 = vcmask 1044484  }
  0x39   :  { %507 = vmatpush3.bf16.msra.mxu0 %v529_v0  ;;  %520 = vmatpush3.bf16.msra.mxu1 %v529_v0  ;;  %v768_v5 = vld [vmem:[#allocation2 + $0x18] sm:$0xff]   ;;  %v488_v6 = vld [vmem:[%s864_s3] ss:$0 sm:$0xff]  ;;  %v250_v49 = vand.u32 127, %v249_v48  ;;  %v792_v50 = vshrl.u32 %v249_v48, 7  ;;  %vm291_vm5 = vcmask 1045509  }
  0x3a   :  { %508 = vmatprep.subr.bf16.mxu0 %v530_v1  ;;  %519 = vmatprep.subr.bf16.mxu1 %v530_v1  ;;  %v499_v23 = vld [vmem:[%s865_s4] ss:$0 sm:$0xff]  ;;  %vm293_vm6 = vcmask 1046534   ;;  %vm295_vm7 = vcmask 1047559   ;;  %vm299_vm8 = vcmask 64512   ;;  %s682_s4 = smov [#allocation9]  }
  0x3b   :  { %510 = vmatprep.mubr.msk.bf16.mxu0 %vm116_vm0, %v762_v2  ;;  %514 = vmatprep.mubr.msk.bf16.mxu1 %vm116_vm0, %v764_v3  ;;  %v253_v53 = vsub.s32 %v250_v49, %v792_v50  ;;  %s474_s11 = sshll.u32 %s682_s4, 4  ;;  %s475_s11 = int_to_ptr.vmem [resolvable:$true] %s474_s11 }
  0x3c   :  { %s625_s12 = scalar_lea.vmem %s475_s11, 128  ;;  %p630_p11 = scmp.lt.s32.totalorder %s475_s11, %s475_s11 }
  0x3d   :  { %509 = vmatpush3.bf16.msra.mxu0 %v530_v1  ;;  %521 = vmatpush3.bf16.msra.mxu1 %v530_v1  ;;  %p626_p10 = scmp.ne.s32.totalorder %s475_s11, %s625_s12  ;;  %p631_p12 = scmp.lt.s32.totalorder %s625_s12, %s625_s12 }
  0x3f   :  { %p632_p13 = por %p631_p12, %p630_p11 }
  0x40   :  { %511 = vmatmul.mubr.msk.bf16.vlgmr.msra.gmra.mrb[0].mxu0 %vm116_vm0, %v766_v4  ;;  %515 = vmatmul.mubr.msk.bf16.vlgmr.msra.gmra.mrb[0].mxu1 %vm116_vm0, %v768_v5 }
  0x41   :  { %p633_p0 = pnand %p632_p13, %p626_p10 }
 0x113   :  { %v512_v7 = vpop.f32.mrb[0].mxu0  ;;  %v516_v8 = vpop.f32.mrb[0].mxu1 }
 0x114   :  { %v172_v9 = vadd.f32 %v512_v7, %v488_v6  ;;  %v163_v10 = vpop.f32.mrb[1].mxu0  ;;  %v179_v11 = vpop.f32.mrb[1].mxu1  ;;  %v188_v22 = vadd.f32 %v516_v8, %v488_v6 }
 0x115   :  { %v164_v12 = vadd.f32 %v488_v6, %v163_v10  ;;  %v513_v13 = vpop.f32.mrb[2].mxu0  ;;  %v517_v14 = vpop.f32.mrb[2].mxu1  ;;  %v180_v19 = vadd.f32 %v488_v6, %v179_v11 }
 0x116   :  { %539 = vtanh.f32 %v172_v9  ;;  %v175_v15 = vadd.f32 %v513_v13, %v488_v6  ;;  %v166_v16 = vpop.f32.mrb[3].mxu0  ;;  %v182_v17 = vpop.f32.mrb[3].mxu1  ;;  %v191_v21 = vadd.f32 %v517_v14, %v488_v6  ;;  %v72_v13 = vld [vmem:[#allocation5] sm:$0xff] }
 0x117   :  { %541 = vtanh.f32 %v164_v12  ;;  %v167_v18 = vadd.f32 %v488_v6, %v166_v16  ;;  %v183_v20 = vadd.f32 %v488_v6, %v182_v17 }
 0x118   :  { %543 = vtanh.f32 %v175_v15 }
 0x119   :  { %545 = vtanh.f32 %v167_v18 }
 0x11a   :  { %547 = vtanh.f32 %v180_v19 }
 0x11b   :  { %549 = vtanh.f32 %v183_v20 }
 0x11c   :  { %551 = vtanh.f32 %v191_v21 }
 0x11d   :  { %553 = vtanh.f32 %v188_v22 }
 0x120   :  { %v540_v24 = vpop.eup %539 }
 0x121   :  { %v542_v25 = vpop.eup %541  ;;  %v211_v26 = vmul.f32 %v540_v24, %v499_v23  ;;  %v329_v24 = vsub.s32 1, %v792_v50 }
 0x122   :  { %v544_v27 = vpop.eup %543  ;;  %v209_v28 = vmul.f32 %v542_v25, %v499_v23  ;;  %v322_v25 = vsub.s32 0, %v792_v50 }
 0x123   :  { %v546_v29 = vpop.eup %545  ;;  %v223_v30 = vsel %vm116_vm0, %v211_v26, 0.0  ;;  %v212_v31 = vmul.f32 %v544_v27, %v499_v23 }
 0x124   :  { %224 = vadd.xlane.f32.xlu1 %v223_v30  ;;  %v217_v32 = vsel %vm116_vm0, %v209_v28, 0.0  ;;  %v210_v33 = vmul.f32 %v546_v29, %v499_v23  ;;  %v548_v34 = vpop.eup %547  ;;  %v336_v30 = vsub.s32 2, %v792_v50 }
 0x125   :  { %218 = vadd.xlane.f32.xlu0 %v217_v32  ;;  %v550_v35 = vpop.eup %549  ;;  %v226_v36 = vsel %vm116_vm0, %v212_v31, 0.0  ;;  %v213_v40 = vmul.f32 %v548_v34, %v499_v23  ;;  %v350_v31 = vsub.s32 4, %v792_v50  ;;  %v343_v34 = vsub.s32 3, %v792_v50 }
 0x126   :  { %v552_v37 = vpop.eup %551  ;;  %v220_v38 = vsel %vm116_vm0, %v210_v33, 0.0  ;;  %v214_v39 = vmul.f32 %v550_v35, %v499_v23  ;;  %v364_v35 = vsub.s32 6, %v792_v50 }
 0x127   :  { %v554_v41 = vpop.eup %553  ;;  %v216_v43 = vmul.f32 %v552_v37, %v499_v23  ;;  %v229_v44 = vsel %vm116_vm0, %v213_v40, 0.0  ;;  %v371_v40 = vsub.s32 7, %v792_v50 }
 0x128   :  { %227 = vadd.xlane.f32.xlu1 %v226_v36  ;;  %v232_v42 = vsel %vm116_vm0, %v214_v39, 0.0  ;;  %v215_v45 = vmul.f32 %v554_v41, %v499_v23 }
 0x129   :  { %221 = vadd.xlane.f32.xlu0 %v220_v38  ;;  %v238_v46 = vsel %vm116_vm0, %v216_v43, 0.0  ;;  %v357_v38 = vsub.s32 5, %v792_v50 }
 0x12a   :  { %v235_v47 = vsel %vm116_vm0, %v215_v45, 0.0 }
 0x12c   :  { %233 = vadd.xlane.f32.xlu1 %v232_v42 }
 0x12d   :  { %230 = vadd.xlane.f32.xlu0 %v229_v44 }
 0x130   :  { %239 = vadd.xlane.f32.xlu1 %v238_v46 }
 0x131   :  { %236 = vadd.xlane.f32.xlu0 %v235_v47 }
 0x1b1   :  { %v225_v51 = vpop.xlane.xlu1 %224 }
 0x1b2   :  { %v219_v52 = vpop.xlane.xlu0 %218  ;;  %v262_v58 = vrot.slane %v225_v51, %v253_v53 }
 0x1b3   :  { %v254_v56 = vrot.slane %v219_v52, %v253_v53 }
 0x1b5   :  { %v228_v54 = vpop.xlane.xlu1 %227 }
 0x1b6   :  { %v222_v55 = vpop.xlane.xlu0 %221  ;;  %v266_v59 = vrot.slane %v228_v54, %v253_v53 }
 0x1b7   :  { %v258_v57 = vrot.slane %v222_v55, %v253_v53 }
 0x1b9   :  { %v284_v60 = vsel %vm283_vm1, %v258_v57, %v254_v56  ;;  %v234_v61 = vpop.xlane.xlu1 %233 }
 0x1ba   :  { %v286_v62 = vsel %vm285_vm2, %v262_v58, %v284_v60  ;;  %v231_v63 = vpop.xlane.xlu0 %230  ;;  %v274_v8 = vrot.slane %v234_v61, %v253_v53 }
 0x1bb   :  { %v288_v0 = vsel %vm287_vm3, %v266_v59, %v286_v62  ;;  %v270_v1 = vrot.slane %v231_v63, %v253_v53 }
 0x1bd   :  { %v290_v6 = vsel %vm289_vm4, %v270_v1, %v288_v0  ;;  %v240_v7 = vpop.xlane.xlu1 %239 }
 0x1be   :  { %v237_v9 = vpop.xlane.xlu0 %236  ;;  %v282_v11 = vrot.slane %v240_v7, %v253_v53  ;;  %v292_v12 = vsel %vm291_vm5, %v274_v8, %v290_v6 }
 0x1bf   :  { %v278_v10 = vrot.slane %v237_v9, %v253_v53 }
 0x1c1   :  { %v294_v14 = vsel %vm293_vm6, %v278_v10, %v292_v12 }
 0x1c2   :  { %v296_v15 = vsel %vm295_vm7, %v282_v11, %v294_v14 }
 0x1c3   :  { %v298_v16 = vmul.f32 %v296_v15, %v72_v13 }
 0x1c5   :  { %v300_v17 = vsel %vm299_vm8, %v298_v16, -inf }
 0x1c6   :  { %301 = vmax.xlane.f32.xlu0 %v300_v17 }
 0x253   :  { %v302_v18 = vpop.xlane.xlu0 %301 }
 0x254   :  { %v303_v19 = vsub.f32 %v298_v16, %v302_v18 }
 0x256   :  { %v304_v20 = vmul.f32 1.442695, %v303_v19 }
 0x258   :  { %555 = vpow2.f32 %v304_v20 }
 0x262   :  { %v556_v21 = vpop.eup %555 }
 0x263   :  { %v306_v22 = vsel %vm299_vm8, %v556_v21, 0.0 }
 0x264   :  { %307 = vadd.xlane.f32.xlu1 %v306_v22 }
 0x2f1   :  { %v308_v23 = vpop.xlane.xlu1 %307 }
 0x2f2   :  { %557 = vrcp.f32 %v308_v23 }
 0x2fc   :  { %v558_v26 = vpop.eup %557 }
 0x2fd   :  { %v310_v27 = vmul.f32 %v558_v26, %v556_v21 }
 0x2ff   :  { %311 = vst.msk [vmem:[#allocation9] sm:$0xff] %vm299_vm8, %v310_v27  ;;  %v330_v28 = vrot.slane %v310_v27, %v329_v24  ;;  %v323_v29 = vrot.slane %v310_v27, %v322_v25  ;;  %v337_v32 = vrot.slane %v310_v27, %v336_v30  ;;  %v351_v33 = vrot.slane %v310_v27, %v350_v31 }
 0x300   :  { %v344_v36 = vrot.slane %v310_v27, %v343_v34  ;;  %v365_v37 = vrot.slane %v310_v27, %v364_v35  ;;  %v358_v39 = vrot.slane %v310_v27, %v357_v38  ;;  %v372_v41 = vrot.slane %v310_v27, %v371_v40 }
 0x301   :  { %332 = vbcast.lane.b32.xlu1 %v330_v28, 256  ;;  %325 = vbcast.lane.b32.xlu0 %v323_v29, 256 }
 0x305   :  { %339 = vbcast.lane.b32.xlu1 %v337_v32, 256  ;;  %353 = vbcast.lane.b32.xlu0 %v351_v33, 256 }
 0x309   :  { %346 = vbcast.lane.b32.xlu1 %v344_v36, 256  ;;  %367 = vbcast.lane.b32.xlu0 %v365_v37, 256 }
 0x30d   :  { %360 = vbcast.lane.b32.xlu1 %v358_v39, 256 }
 0x311   :  { %374 = vbcast.lane.b32.xlu1 %v372_v41, 256 }
 0x312   :  { %636 = shalt.err (!%p633_p0)
}
 0x313   :  { %s637_s15 = scalar_lea.hbm %s867_s6, 128 }
 0x314   :  { %p638_p1 = scmp.ne.s32.totalorder %s867_s6, %s637_s15  ;;  %p641_p2 = scmp.lt.u32.totalorder %s637_s15, %s867_s6 }
 0x316   :  { %p643_p3 = pnand %p641_p2, %p638_p1 }
 0x318   :  { %646 = shalt.err (!%p643_p3)
}
 0x319   :  { %477 = dma.vmem_to_hbm [thread:$0]  %s475_s11, 128, %s867_s6, [#allocation10]   ;;  %v313_v42 = vunpack.c.h.bf16 %v762_v2  ;;  %v312_v43 = vunpack.c.l.bf16 %v762_v2  ;;  %vm384_vm9 = vcmask 130048   ;;  %v314_v48 = vunpack.c.l.bf16 %v766_v4 }
 0x31a   :  { %v316_v49 = vunpack.c.l.bf16 %v764_v3  ;;  %v315_v2 = vunpack.c.h.bf16 %v766_v4  ;;  %v318_v58 = vunpack.c.l.bf16 %v768_v5  ;;  %v317_v11 = vunpack.c.h.bf16 %v764_v3  ;;  %s683_s6 = smov [#allocation8]  }
 0x31b   :  { %v319_v19 = vunpack.c.h.bf16 %v768_v5  ;;  %s464_s21 = sshll.u32 %s683_s6, 4  ;;  %s465_s21 = int_to_ptr.vmem [resolvable:$true] %s464_s21 }
 0x31c   :  { %s647_s22 = scalar_lea.vmem %s465_s21, 128  ;;  %p652_p5 = scmp.lt.s32.totalorder %s465_s21, %s465_s21 }
 0x31d   :  { %p648_p4 = scmp.ne.s32.totalorder %s465_s21, %s647_s22  ;;  %p653_p6 = scmp.lt.s32.totalorder %s647_s22, %s647_s22 }
 0x31f   :  { %p654_p7 = por %p653_p6, %p652_p5 }
 0x321   :  { %p655_p8 = pnand %p654_p7, %p648_p4 }
 0x373   :  { %v333_v44 = vpop.permute.xlu1 %332  ;;  %v326_v45 = vpop.permute.xlu0 %325 }
 0x374   :  { %v377_v46 = vmul.f32 %v333_v44, %v313_v42  ;;  %v376_v47 = vmul.f32 %v326_v45, %v312_v43 }
 0x376   :  { %v392_v50 = vsel %vm384_vm9, %v377_v46, 0.0  ;;  %v385_v51 = vsel %vm384_vm9, %v376_v47, 0.0 }
 0x377   :  { %v393_v52 = vrot.slane %v392_v50, 4  ;;  %v386_v53 = vrot.slane %v385_v51, 4  ;;  %v340_v54 = vpop.permute.xlu1 %339  ;;  %v354_v55 = vpop.permute.xlu0 %353 }
 0x378   :  { %v378_v56 = vmul.f32 %v340_v54, %v314_v48  ;;  %v380_v57 = vmul.f32 %v354_v55, %v316_v49 }
 0x379   :  { %v394_v59 = vadd.f32 %v393_v52, %v392_v50  ;;  %v387_v60 = vadd.f32 %v386_v53, %v385_v51 }
 0x37a   :  { %v399_v61 = vsel %vm384_vm9, %v378_v56, 0.0  ;;  %v413_v62 = vsel %vm384_vm9, %v380_v57, 0.0 }
 0x37b   :  { %v395_v63 = vrot.slane %v394_v59, 2  ;;  %v388_v0 = vrot.slane %v387_v60, 2  ;;  %v400_v1 = vrot.slane %v399_v61, 4  ;;  %v414_v6 = vrot.slane %v413_v62, 4  ;;  %v347_v7 = vpop.permute.xlu1 %346  ;;  %v368_v8 = vpop.permute.xlu0 %367 }
 0x37c   :  { %v379_v9 = vmul.f32 %v347_v7, %v315_v2  ;;  %v382_v10 = vmul.f32 %v368_v8, %v318_v58 }
 0x37d   :  { %v396_v12 = vadd.f32 %v395_v63, %v394_v59  ;;  %v401_v4 = vadd.f32 %v400_v1, %v399_v61  ;;  %v415_v13 = vadd.f32 %v414_v6, %v413_v62  ;;  %v389_v14 = vadd.f32 %v388_v0, %v387_v60 }
 0x37e   :  { %v406_v15 = vsel %vm384_vm9, %v379_v9, 0.0  ;;  %v427_v16 = vsel %vm384_vm9, %v382_v10, 0.0 }
 0x37f   :  { %v402_v17 = vrot.slane %v401_v4, 2  ;;  %v361_v18 = vpop.permute.xlu1 %360  ;;  %v416_v20 = vrot.slane %v415_v13, 2  ;;  %v407_v21 = vrot.slane %v406_v15, 4  ;;  %v428_v22 = vrot.slane %v427_v16, 4 }
 0x380   :  { %v381_v23 = vmul.f32 %v361_v18, %v317_v11  ;;  %v397_v24 = vrot.slane %v396_v12, 1  ;;  %v390_v26 = vrot.slane %v389_v14, 1 }
 0x381   :  { %v403_v25 = vadd.f32 %v402_v17, %v401_v4  ;;  %v408_v3 = vadd.f32 %v407_v21, %v406_v15  ;;  %v429_v27 = vadd.f32 %v428_v22, %v427_v16  ;;  %v417_v32 = vadd.f32 %v416_v20, %v415_v13 }
 0x382   :  { %v420_v28 = vsel %vm384_vm9, %v381_v23, 0.0  ;;  %v398_v5 = vadd.f32 %v397_v24, %v396_v12  ;;  %v391_v37 = vadd.f32 %v390_v26, %v389_v14 }
 0x383   :  { %v404_v29 = vrot.slane %v403_v25, 1  ;;  %v421_v30 = vrot.slane %v420_v28, 4  ;;  %v375_v31 = vpop.permute.xlu1 %374  ;;  %v409_v33 = vrot.slane %v408_v3, 2  ;;  %v430_v34 = vrot.slane %v429_v27, 2 }
 0x384   :  { %v383_v35 = vmul.f32 %v375_v31, %v319_v19  ;;  %v418_v43 = vrot.slane %v417_v32, 1  ;;  %v449_v48 = vsel %vm283_vm1, %v398_v5, %v391_v37 }
 0x385   :  { %v422_v36 = vadd.f32 %v421_v30, %v420_v28  ;;  %v410_v38 = vadd.f32 %v409_v33, %v408_v3  ;;  %v405_v40 = vadd.f32 %v404_v29, %v403_v25  ;;  %v431_v45 = vadd.f32 %v430_v34, %v429_v27 }
 0x386   :  { %v434_v39 = vsel %vm384_vm9, %v383_v35, 0.0  ;;  %v419_v53 = vadd.f32 %v418_v43, %v417_v32 }
 0x387   :  { %v423_v41 = vrot.slane %v422_v36, 2  ;;  %v435_v42 = vrot.slane %v434_v39, 4  ;;  %v411_v44 = vrot.slane %v410_v38, 1  ;;  %v450_v50 = vsel %vm285_vm2, %v405_v40, %v449_v48 }
 0x388   :  { %v432_v55 = vrot.slane %v431_v45, 1 }
 0x389   :  { %v424_v46 = vadd.f32 %v423_v41, %v422_v36  ;;  %v436_v47 = vadd.f32 %v435_v42, %v434_v39  ;;  %v412_v49 = vadd.f32 %v411_v44, %v410_v38 }
 0x38a   :  { %v433_v60 = vadd.f32 %v432_v55, %v431_v45 }
 0x38b   :  { %v425_v51 = vrot.slane %v424_v46, 1  ;;  %v437_v52 = vrot.slane %v436_v47, 2  ;;  %v451_v54 = vsel %vm287_vm3, %v412_v49, %v450_v50 }
 0x38c   :  { %v452_v2 = vsel %vm289_vm4, %v419_v53, %v451_v54 }
 0x38d   :  { %v426_v56 = vadd.f32 %v425_v51, %v424_v46  ;;  %v438_v57 = vadd.f32 %v437_v52, %v436_v47 }
 0x38f   :  { %v439_v58 = vrot.slane %v438_v57, 1  ;;  %v453_v59 = vsel %vm291_vm5, %v426_v56, %v452_v2 }
 0x390   :  { %v454_v62 = vsel %vm293_vm6, %v433_v60, %v453_v59 }
 0x391   :  { %v440_v61 = vadd.f32 %v439_v58, %v438_v57 }
 0x393   :  { %v455_v63 = vsel %vm295_vm7, %v440_v61, %v454_v62 }
 0x394   :  { %457 = vst.msk [vmem:[#allocation8] sm:$0xff] %vm384_vm9, %v455_v63 }
 0x395   :  { %658 = shalt.err (!%p655_p8)
}
 0x396   :  { %s659_s26 = scalar_lea.hbm %s866_s5, 128 }
 0x397   :  { %p660_p9 = scmp.ne.s32.totalorder %s866_s5, %s659_s26  ;;  %p663_p10 = scmp.lt.u32.totalorder %s659_s26, %s866_s5 }
 0x399   :  { %p665_p11 = pnand %p663_p10, %p660_p9 }
 0x39b   :  { %668 = shalt.err (!%p665_p11)
}
 0x39c   :  { %467 = dma.vmem_to_hbm [thread:$0]  %s465_s21, 128, %s866_s5, [#allocation4]  }
 0x39d   :  { %673 = dma.done.wait [#allocation4], 128  }
 0x39e   :  { %674 = vsyncadd [#allocation4], 4294967168 }
 0x39f   :  { %675 = dma.done.wait [#allocation10], 128  }
 0x3a0   :  { %676 = vsyncadd [#allocation10], 4294967168 }
 0x3a1   :  { %484 = vsyncpa [#allocation3], 1 }
 0x3a2   :  { %485 = vsyncpa [#allocation6], 1 }
 0x3a3   :  { %486 = vsyncpa [#allocation4], 1 }
 0x3a4   :  { %487 = vsyncpa [#allocation10], 1 }

</bundles_post_ra>
